<compile_context>
chip_gen: v7x
topology: tpu7x:2x2x1
jax: 0.10.0
libtpu: 0.0.40
codegen_flags: <defaults>
</compile_context>

<pallas_src>
import math
from functools import partial

import jax
import jax.numpy as jnp
from jax import lax
from jax.experimental import pallas as pl
from jax.experimental.pallas import tpu as pltpu


def _loss_kernel(e_ref, g_ref, gts_ref, out_ref,
                 tri, acc_bce, acc_lov, cs_pref, prev_jac,
                 *, n, C, KB, p):
    step = pl.program_id(0)
    W = KB * C
    needs_mask = (p % W) != 0            # static: only mask when a ragged tail exists

    @pl.when(step == 0)
    def _init():
        r = lax.broadcasted_iota(jnp.int32, (C, C), 0)
        c = lax.broadcasted_iota(jnp.int32, (C, C), 1)
        tri[...] = (r <= c).astype(jnp.bfloat16)      # inclusive-cumsum operator; exact for 0/1
        acc_bce[...] = jnp.zeros_like(acc_bce)
        acc_lov[...] = jnp.zeros_like(acc_lov)
        cs_pref[...] = jnp.zeros_like(cs_pref)
        prev_jac[...] = jnp.zeros_like(prev_jac)

    gts = gts_ref[...]                                 # (n,1) per-image foreground count
    lane = lax.broadcasted_iota(jnp.int32, (n, C), 1)  # hoisted once, reused by every chunk
    base = step * W

    for j in range(KB):                                # static chunk loop (unrolled)
        off = j * C
        e = e_ref[:, off:off + C]                      # (n,C) f32 sorted hinge errors
        gb = g_ref[:, off:off + C]                     # (n,C) bf16 sorted labels
        gpos = base + off + lane                       # global sorted position
        if needs_mask:
            valid = gpos < p
            gb = jnp.where(valid, gb, jnp.zeros_like(gb))   # mask labels BEFORE the cumsum

        g = gb.astype(jnp.float32)

        # ---- BCEWithLogits partial sums, reconstructed from the sorted stream ----
        # e = 1 - x*sign, sign = 2g-1 (so sign^2 = 1)  =>  x = sign*(1-e), y = g.
        x = (2.0 * g - 1.0) * (1.0 - e)
        # Stable softplus form; exp/log ride the EUP slot.  (f32 |error| <= ~1e-7 vs log1p.)
        bce = jnp.maximum(x, 0.0) - x * g + jnp.log(1.0 + jnp.exp(-jnp.abs(x)))

        # ---- Lovasz hinge: chunked cumsum(gt_sorted) on the MXU (bf16 operands, f32 acc) ----
        cs = cs_pref[...] + jnp.dot(gb, tri[...], preferred_element_type=jnp.float32)
        cs_pref[...] = cs[:, C - 1:C]                  # carry running prefix

        intersection = gts - cs
        union = gts + (gpos + 1).astype(jnp.float32) - cs     # cumsum(1-gt) = (k+1) - cumsum(gt)
        jac = 1.0 - intersection / union                      # exact divide: diff is O(1/P)

        # first difference grad[k] = jac[k] - jac[k-1]; jac[-1] carried across chunks/steps
        rolled = pltpu.roll(jac, shift=1, axis=1)
        prev = jnp.where(lane == 0, prev_jac[...], rolled)
        grad = jac - prev
        prev_jac[...] = jac[:, C - 1:C]

        hinge = jnp.maximum(e, 0.0) * grad
        if needs_mask:
            bce = jnp.where(valid, bce, 0.0)
            hinge = jnp.where(valid, hinge, 0.0)

        acc_bce[...] += bce                            # lane-resident accumulation (VPU only)
        acc_lov[...] += hinge

    # ---- finalize: 0.8 * mean(BCE) + 0.2 * mean(per-image lovasz); one cross-lane reduce ----
    @pl.when(step == pl.num_programs(0) - 1)
    def _fin():
        bce_mean = jnp.sum(acc_bce[...]) * (1.0 / float(n * p))
        lov_mean = jnp.sum(acc_lov[...]) * (1.0 / float(n))
        out_ref[...] = jnp.broadcast_to(
            0.8 * bce_mean + 0.2 * lov_mean, (1, 1)).astype(jnp.float32)


def lovasz_bce_loss(inputs, targets):
    """inputs, targets: NCHW arrays (logits / binary labels). Returns scalar loss."""
    n = inputs.shape[0]
    p = math.prod(inputs.shape[1:])
    x = inputs.reshape(n, p).astype(jnp.float32)
    y = targets.reshape(n, p).astype(jnp.float32)

    # Per-image descending sort of hinge errors; gt carried along in one multi-operand sort.
    # TODO(synk): pack g into the sort key (single-operand sort path) if the sort dominates e2e.
    signs = 2.0 * y - 1.0
    errors = 1.0 - x * signs
    neg_e_sorted, gt_sorted = lax.sort((-errors, y), dimension=1, num_keys=1)
    errors_sorted = -neg_e_sorted
    gts = jnp.sum(y, axis=1, keepdims=True)            # permutation-invariant foreground count
    g_bf16 = gt_sorted.astype(jnp.bfloat16)            # exact for 0/1; halves this stream's bytes

    # Fixed MXU-tile-sized cumsum chunk; KB chunks per grid step amortize per-step overhead.
    C = min(256, max(128, ((p + 127) // 128) * 128))
    num_chunks = -(-p // C)
    KB = min(8, num_chunks)
    W = KB * C
    num_steps = -(-num_chunks // KB)                    # == cdiv(p, W)

    blk = pl.BlockSpec((n, W), lambda s: (0, s))
    # TODO(synk): on v7x, add a leading "parallel" image-group grid axis to use both TensorCores.
    out = pl.pallas_call(
        partial(_loss_kernel, n=n, C=C, KB=KB, p=p),
        out_shape=jax.ShapeDtypeStruct((1, 1), jnp.float32),
        grid_spec=pltpu.PrefetchScalarGridSpec(
            num_scalar_prefetch=0,
            grid=(num_steps,),
            in_specs=[blk, blk,
                      pl.BlockSpec((n, 1), lambda s: (0, 0))],   # gts: fetched once, resident
            out_specs=pl.BlockSpec((1, 1), lambda s: (0, 0)),
            scratch_shapes=[
                pltpu.VMEM((C, C), jnp.bfloat16),   # fixed tri cumsum operator (~128 KiB)
                pltpu.VMEM((n, C), jnp.float32),    # BCE lane-resident partial sums
                pltpu.VMEM((n, C), jnp.float32),    # lovasz lane-resident partial sums
                pltpu.VMEM((n, 1), jnp.float32),    # cumsum(gt) prefix carry
                pltpu.VMEM((n, 1), jnp.float32),    # last-jaccard carry
            ],
        ),
        # per-image carries across the lane axis -> this grid axis must run sequentially
        compiler_params=pltpu.CompilerParams(dimension_semantics=("arbitrary",)),
    )(errors_sorted, g_bf16, gts)
    return out[0, 0]


if __name__ == "__main__":
    key = jax.random.PRNGKey(0)
    k1, k2 = jax.random.split(key)
    # Binary segmentation: N=2, C=1, H=W=16 (logits + 0/1 mask).
    inputs = jax.random.normal(k1, (2, 1, 16, 16), dtype=jnp.float32)
    targets = (jax.random.uniform(k2, (2, 1, 16, 16)) > 0.5).astype(jnp.float32)

    loss = lovasz_bce_loss(inputs, targets)
    jax.block_until_ready(loss)
    print("KERNEL_OK")
</pallas_src>

<mosaic_0001>
module attributes {stable_mosaic.version = 11 : i64} {
  func.func @_loss_kernel(%arg0: i32, %arg1: memref<2x256xf32, #tpu.memory_space<vmem>>, %arg2: memref<2x256xbf16, #tpu.memory_space<vmem>>, %arg3: memref<2x1xf32, #tpu.memory_space<vmem>>, %arg4: memref<1x1xf32, #tpu.memory_space<vmem>>, %arg5: memref<256x256xbf16, #tpu.memory_space<vmem>>, %arg6: memref<2x256xf32, #tpu.memory_space<vmem>>, %arg7: memref<2x256xf32, #tpu.memory_space<vmem>>, %arg8: memref<2x1xf32, #tpu.memory_space<vmem>>, %arg9: memref<2x1xf32, #tpu.memory_space<vmem>>) attributes {dimension_semantics = [#tpu.dimension_semantics<arbitrary>], iteration_bounds = array<i64: 1>, scalar_prefetch = 0 : i64, scratch_operands = 5 : i64, tpu.core_type = #tpu.core_type<tc>, window_params = [{transform_indices = @transform_0, window_bounds = array<i64: 2, 256>}, {transform_indices = @transform_1, window_bounds = array<i64: 2, 256>}, {pipeline_mode = #tpu.pipeline_mode<synchronous>, transform_indices = @transform_2, window_bounds = array<i64: 2, 1>}, {pipeline_mode = #tpu.pipeline_mode<synchronous>, transform_indices = @transform_3, window_bounds = array<i64: 1, 1>}]} {
    %c0_i32 = arith.constant 0 : i32
    %0 = arith.cmpi eq, %arg0, %c0_i32 : i32
    %1 = arith.extui %0 : i1 to i32
    %c0_i32_0 = arith.constant 0 : i32
    %2 = arith.cmpi ne, %1, %c0_i32_0 : i32
    scf.if %2 {
      %71 = tpu.iota {dimensions = array<i32: 0>} : vector<256x256xi32>
      %72 = tpu.iota {dimensions = array<i32: 1>} : vector<256x256xi32>
      %73 = arith.cmpi sle, %71, %72 : vector<256x256xi32>
      %74 = arith.extui %73 : vector<256x256xi1> to vector<256x256xi32>
      %75 = arith.sitofp %74 : vector<256x256xi32> to vector<256x256xf32>
      %76 = arith.truncf %75 : vector<256x256xf32> to vector<256x256xbf16>
      %c0_37 = arith.constant 0 : index
      %c0_38 = arith.constant 0 : index
      %77 = vector.load %arg5[%c0_37, %c0_38] : memref<256x256xbf16, #tpu.memory_space<vmem>>, vector<256x256xbf16>
      tpu.vector_store %arg5[%c0_37, %c0_38], %76 {strides = array<i32>} : memref<256x256xbf16, #tpu.memory_space<vmem>>, vector<256x256xbf16>,
      %cst_39 = arith.constant 0.000000e+00 : f32
      %78 = vector.broadcast %cst_39 : f32 to vector<2x256xf32>
      %c0_40 = arith.constant 0 : index
      %c0_41 = arith.constant 0 : index
      %79 = vector.load %arg6[%c0_40, %c0_41] : memref<2x256xf32, #tpu.memory_space<vmem>>, vector<2x256xf32>
      tpu.vector_store %arg6[%c0_40, %c0_41], %78 {strides = array<i32>} : memref<2x256xf32, #tpu.memory_space<vmem>>, vector<2x256xf32>,
      %cst_42 = arith.constant 0.000000e+00 : f32
      %80 = vector.broadcast %cst_42 : f32 to vector<2x256xf32>
      %c0_43 = arith.constant 0 : index
      %c0_44 = arith.constant 0 : index
      %81 = vector.load %arg7[%c0_43, %c0_44] : memref<2x256xf32, #tpu.memory_space<vmem>>, vector<2x256xf32>
      tpu.vector_store %arg7[%c0_43, %c0_44], %80 {strides = array<i32>} : memref<2x256xf32, #tpu.memory_space<vmem>>, vector<2x256xf32>,
      %cst_45 = arith.constant 0.000000e+00 : f32
      %82 = vector.broadcast %cst_45 : f32 to vector<2x1xf32>
      %c0_46 = arith.constant 0 : index
      %c0_47 = arith.constant 0 : index
      %83 = vector.load %arg8[%c0_46, %c0_47] : memref<2x1xf32, #tpu.memory_space<vmem>>, vector<2x1xf32>
      tpu.vector_store %arg8[%c0_46, %c0_47], %82 {strides = array<i32>} : memref<2x1xf32, #tpu.memory_space<vmem>>, vector<2x1xf32>,
      %cst_48 = arith.constant 0.000000e+00 : f32
      %84 = vector.broadcast %cst_48 : f32 to vector<2x1xf32>
      %c0_49 = arith.constant 0 : index
      %c0_50 = arith.constant 0 : index
      %85 = vector.load %arg9[%c0_49, %c0_50] : memref<2x1xf32, #tpu.memory_space<vmem>>, vector<2x1xf32>
      tpu.vector_store %arg9[%c0_49, %c0_50], %84 {strides = array<i32>} : memref<2x1xf32, #tpu.memory_space<vmem>>, vector<2x1xf32>,
    } else {
    }
    %c0 = arith.constant 0 : index
    %c0_1 = arith.constant 0 : index
    %3 = vector.load %arg3[%c0, %c0_1] : memref<2x1xf32, #tpu.memory_space<vmem>>, vector<2x1xf32>
    %4 = tpu.iota {dimensions = array<i32: 1>} : vector<2x256xi32>
    %c256_i32 = arith.constant 256 : i32
    %5 = arith.muli %arg0, %c256_i32 : i32
    %c0_2 = arith.constant 0 : index
    %c0_3 = arith.constant 0 : index
    %6 = vector.load %arg1[%c0_2, %c0_3] : memref<2x256xf32, #tpu.memory_space<vmem>>, vector<2x256xf32>
    %c0_4 = arith.constant 0 : index
    %c0_5 = arith.constant 0 : index
    %7 = vector.load %arg2[%c0_4, %c0_5] : memref<2x256xbf16, #tpu.memory_space<vmem>>, vector<2x256xbf16>
    %c0_i32_6 = arith.constant 0 : i32
    %8 = arith.addi %5, %c0_i32_6 : i32
    %9 = vector.broadcast %8 : i32 to vector<2x256xi32>
    %10 = arith.addi %9, %4 : vector<2x256xi32>
    %11 = arith.extf %7 : vector<2x256xbf16> to vector<2x256xf32>
    %cst = arith.constant 2.000000e+00 : f32
    %12 = vector.broadcast %cst : f32 to vector<2x256xf32>
    %13 = arith.mulf %12, %11 : vector<2x256xf32>
    %cst_7 = arith.constant 1.000000e+00 : f32
    %14 = vector.broadcast %cst_7 : f32 to vector<2x256xf32>
    %15 = arith.subf %13, %14 : vector<2x256xf32>
    %cst_8 = arith.constant 1.000000e+00 : f32
    %16 = vector.broadcast %cst_8 : f32 to vector<2x256xf32>
    %17 = arith.subf %16, %6 : vector<2x256xf32>
    %18 = arith.mulf %15, %17 : vector<2x256xf32>
    %cst_9 = arith.constant 0.000000e+00 : f32
    %19 = vector.broadcast %cst_9 : f32 to vector<2x256xf32>
    %20 = arith.maximumf %18, %19 : vector<2x256xf32>
    %21 = arith.mulf %18, %11 : vector<2x256xf32>
    %22 = arith.subf %20, %21 : vector<2x256xf32>
    %23 = math.absf %18 : vector<2x256xf32>
    %cst_10 = arith.constant 0.000000e+00 : f32
    %24 = vector.broadcast %cst_10 : f32 to vector<2x256xf32>
    %25 = arith.subf %24, %23 : vector<2x256xf32>
    %26 = math.exp %25 : vector<2x256xf32>
    %cst_11 = arith.constant 1.000000e+00 : f32
    %27 = vector.broadcast %cst_11 : f32 to vector<2x256xf32>
    %28 = arith.addf %27, %26 : vector<2x256xf32>
    %29 = math.log %28 : vector<2x256xf32>
    %30 = arith.addf %22, %29 : vector<2x256xf32>
    %c0_12 = arith.constant 0 : index
    %c0_13 = arith.constant 0 : index
    %31 = vector.load %arg8[%c0_12, %c0_13] : memref<2x1xf32, #tpu.memory_space<vmem>>, vector<2x1xf32>
    %c0_14 = arith.constant 0 : index
    %c0_15 = arith.constant 0 : index
    %32 = vector.load %arg5[%c0_14, %c0_15] : memref<256x256xbf16, #tpu.memory_space<vmem>>, vector<256x256xbf16>
    %cst_16 = arith.constant dense<0.000000e+00> : vector<2x256xf32>
    %33 = tpu.matmul %7, %32, %cst_16 {dimension_numbers = #tpu.dot_dimension_numbers<[1], [0], [0], [1], [0, 0, 1, 1], [], []>} : vector<2x256xbf16>, vector<256x256xbf16>, vector<2x256xf32> -> vector<2x256xf32>
    %34 = vector.broadcast %31 : vector<2x1xf32> to vector<2x256xf32>
    %35 = arith.addf %34, %33 : vector<2x256xf32>
    %36 = vector.extract_strided_slice %35 {offsets = [0, 255], sizes = [2, 1], strides = [1, 1]} : vector<2x256xf32> to vector<2x1xf32>
    %c0_17 = arith.constant 0 : index
    %c0_18 = arith.constant 0 : index
    %37 = vector.load %arg8[%c0_17, %c0_18] : memref<2x1xf32, #tpu.memory_space<vmem>>, vector<2x1xf32>
    tpu.vector_store %arg8[%c0_17, %c0_18], %36 {strides = array<i32>} : memref<2x1xf32, #tpu.memory_space<vmem>>, vector<2x1xf32>,
    %38 = vector.broadcast %3 : vector<2x1xf32> to vector<2x256xf32>
    %39 = arith.subf %38, %35 : vector<2x256xf32>
    %c1_i32 = arith.constant 1 : i32
    %40 = vector.broadcast %c1_i32 : i32 to vector<2x256xi32>
    %41 = arith.addi %10, %40 : vector<2x256xi32>
    %42 = arith.sitofp %41 : vector<2x256xi32> to vector<2x256xf32>
    %43 = vector.broadcast %3 : vector<2x1xf32> to vector<2x256xf32>
    %44 = arith.addf %43, %42 : vector<2x256xf32>
    %45 = arith.subf %44, %35 : vector<2x256xf32>
    %46 = arith.divf %39, %45 : vector<2x256xf32>
    %cst_19 = arith.constant 1.000000e+00 : f32
    %47 = vector.broadcast %cst_19 : f32 to vector<2x256xf32>
    %48 = arith.subf %47, %46 : vector<2x256xf32>
    %c1_i32_20 = arith.constant 1 : i32
    %49 = tpu.dynamic_rotate %48 by %c1_i32_20 dim 1 : vector<2x256xf32>, i32 -> vector<2x256xf32>
    %c0_i32_21 = arith.constant 0 : i32
    %50 = vector.broadcast %c0_i32_21 : i32 to vector<2x256xi32>
    %51 = arith.cmpi eq, %4, %50 : vector<2x256xi32>
    %c0_22 = arith.constant 0 : index
    %c0_23 = arith.constant 0 : index
    %52 = vector.load %arg9[%c0_22, %c0_23] : memref<2x1xf32, #tpu.memory_space<vmem>>, vector<2x1xf32>
    %53 = vector.shape_cast %52 : vector<2x1xf32> to vector<2x1xf32>
    %54 = vector.broadcast %53 : vector<2x1xf32> to vector<2x256xf32>
    %55 = arith.select %51, %54, %49 : vector<2x256xi1>, vector<2x256xf32>
    %56 = arith.subf %48, %55 : vector<2x256xf32>
    %57 = vector.extract_strided_slice %48 {offsets = [0, 255], sizes = [2, 1], strides = [1, 1]} : vector<2x256xf32> to vector<2x1xf32>
    %c0_24 = arith.constant 0 : index
    %c0_25 = arith.constant 0 : index
    %58 = vector.load %arg9[%c0_24, %c0_25] : memref<2x1xf32, #tpu.memory_space<vmem>>, vector<2x1xf32>
    tpu.vector_store %arg9[%c0_24, %c0_25], %57 {strides = array<i32>} : memref<2x1xf32, #tpu.memory_space<vmem>>, vector<2x1xf32>,
    %cst_26 = arith.constant 0.000000e+00 : f32
    %59 = vector.broadcast %cst_26 : f32 to vector<2x256xf32>
    %60 = arith.maximumf %6, %59 : vector<2x256xf32>
    %61 = arith.mulf %60, %56 : vector<2x256xf32>
    %c0_27 = arith.constant 0 : index
    %c0_28 = arith.constant 0 : index
    %62 = vector.load %arg6[%c0_27, %c0_28] : memref<2x256xf32, #tpu.memory_space<vmem>>, vector<2x256xf32>
    %63 = arith.addf %62, %30 : vector<2x256xf32>
    %c0_29 = arith.constant 0 : index
    %c0_30 = arith.constant 0 : index
    %64 = vector.load %arg6[%c0_29, %c0_30] : memref<2x256xf32, #tpu.memory_space<vmem>>, vector<2x256xf32>
    tpu.vector_store %arg6[%c0_29, %c0_30], %63 {strides = array<i32>} : memref<2x256xf32, #tpu.memory_space<vmem>>, vector<2x256xf32>,
    %c0_31 = arith.constant 0 : index
    %c0_32 = arith.constant 0 : index
    %65 = vector.load %arg7[%c0_31, %c0_32] : memref<2x256xf32, #tpu.memory_space<vmem>>, vector<2x256xf32>
    %66 = arith.addf %65, %61 : vector<2x256xf32>
    %c0_33 = arith.constant 0 : index
    %c0_34 = arith.constant 0 : index
    %67 = vector.load %arg7[%c0_33, %c0_34] : memref<2x256xf32, #tpu.memory_space<vmem>>, vector<2x256xf32>
    tpu.vector_store %arg7[%c0_33, %c0_34], %66 {strides = array<i32>} : memref<2x256xf32, #tpu.memory_space<vmem>>, vector<2x256xf32>,
    %c0_i32_35 = arith.constant 0 : i32
    %68 = arith.cmpi eq, %arg0, %c0_i32_35 : i32
    %69 = arith.extui %68 : i1 to i32
    %c0_i32_36 = arith.constant 0 : i32
    %70 = arith.cmpi ne, %69, %c0_i32_36 : i32
    scf.if %70 {
      %c0_37 = arith.constant 0 : index
      %c0_38 = arith.constant 0 : index
      %71 = vector.load %arg6[%c0_37, %c0_38] : memref<2x256xf32, #tpu.memory_space<vmem>>, vector<2x256xf32>
      %72 = vector.shape_cast %71 : vector<2x256xf32> to vector<1x2x256xf32>
      %cst_39 = arith.constant dense<0.000000e+00> : vector<1xf32>
      %73 = vector.multi_reduction <add>, %72, %cst_39 [1, 2] : vector<1x2x256xf32> to vector<1xf32>
      %74 = vector.shape_cast %73 : vector<1xf32> to vector<1x1x1xf32>
      %75 = vector.extract %74[0, 0, 0] : f32 from vector<1x1x1xf32>
      %cst_40 = arith.constant 0.001953125 : f32
      %76 = arith.mulf %75, %cst_40 : f32
      %c0_41 = arith.constant 0 : index
      %c0_42 = arith.constant 0 : index
      %77 = vector.load %arg7[%c0_41, %c0_42] : memref<2x256xf32, #tpu.memory_space<vmem>>, vector<2x256xf32>
      %78 = vector.shape_cast %77 : vector<2x256xf32> to vector<1x2x256xf32>
      %cst_43 = arith.constant dense<0.000000e+00> : vector<1xf32>
      %79 = vector.multi_reduction <add>, %78, %cst_43 [1, 2] : vector<1x2x256xf32> to vector<1xf32>
      %80 = vector.shape_cast %79 : vector<1xf32> to vector<1x1x1xf32>
      %81 = vector.extract %80[0, 0, 0] : f32 from vector<1x1x1xf32>
      %cst_44 = arith.constant 5.000000e-01 : f32
      %82 = arith.mulf %81, %cst_44 : f32
      %cst_45 = arith.constant 8.000000e-01 : f32
      %83 = arith.mulf %cst_45, %76 : f32
      %cst_46 = arith.constant 2.000000e-01 : f32
      %84 = arith.mulf %cst_46, %82 : f32
      %85 = arith.addf %83, %84 : f32
      %86 = vector.broadcast %85 : f32 to vector<1x1xf32>
      %c0_47 = arith.constant 0 : index
      %c0_48 = arith.constant 0 : index
      %87 = vector.load %arg4[%c0_47, %c0_48] : memref<1x1xf32, #tpu.memory_space<vmem>>, vector<1x1xf32>
      tpu.vector_store %arg4[%c0_47, %c0_48], %86 {strides = array<i32>} : memref<1x1xf32, #tpu.memory_space<vmem>>, vector<1x1xf32>,
    } else {
    }
    return
  }
  func.func @transform_0(%arg0: i32) -> (i32, i32) {
    %c0_i32 = arith.constant 0 : i32
    %c0_i32_0 = arith.constant 0 : i32
    return %c0_i32, %arg0 : i32, i32
  }
  func.func @transform_1(%arg0: i32) -> (i32, i32) {
    %c0_i32 = arith.constant 0 : i32
    %c0_i32_0 = arith.constant 0 : i32
    return %c0_i32, %arg0 : i32, i32
  }
  func.func @transform_2(%arg0: i32) -> (i32, i32) {
    %c0_i32 = arith.constant 0 : i32
    %c0_i32_0 = arith.constant 0 : i32
    %c0_i32_1 = arith.constant 0 : i32
    return %c0_i32, %c0_i32_0 : i32, i32
  }
  func.func @transform_3(%arg0: i32) -> (i32, i32) {
    %c0_i32 = arith.constant 0 : i32
    %c0_i32_0 = arith.constant 0 : i32
    %c0_i32_1 = arith.constant 0 : i32
    return %c0_i32, %c0_i32_0 : i32, i32
  }
}

</mosaic_0001>

<bundles_post_ra>
// kernel: tpu_custom_call.1
= control target key start
LH: loop header
LB: loop body
LE: loop exit
PB: predicated region body
PF: predicated region fallthrough
CT: control target
= control target key end

     0   :  { %8 = vsyncpa [#allocation8], 0  ;;  %s942_s0 = inlined_call_operand.hbm [shape: f32[2,256], index: 0, kind: input, shape index: {}]   ;;  %s943_s1 = inlined_call_operand.vmem [shape: bf16[2,256], index: 1, kind: input, shape index: {}]   ;;  %s944_s2 = inlined_call_operand.vmem [shape: f32[2,1], index: 2, kind: input, shape index: {}]   ;;  %s945_s3 = inlined_call_operand.hbm [shape: f32[1,1], index: 3, kind: output, shape index: {}]  }
   0x1   :  { %9 = vsyncpa [#allocation9], 0  ;;  %s743_s12 = smov [#allocation7]   ;;  %s695_s16 = scalar_lea.hbm %s942_s0, 64 }
   0x2   :  { %s16_s13 = sshll.u32 %s743_s12, 4  ;;  %p696_p0 = scmp.ne.s32.totalorder %s942_s0, %s695_s16  ;;  %s17_s13 = int_to_ptr.vmem [resolvable:$true] %s16_s13 }
   0x3   :  { %p699_p1 = scmp.lt.u32.totalorder %s695_s16, %s942_s0 }
   0x5   :  { %p701_p2 = pnand %p699_p1, %p696_p0 }
   0x7   :  { %704 = shalt.err (!%p701_p2)
}
   0x8   :  { %s705_s21 = scalar_lea.vmem %s17_s13, 64  ;;  %p710_p4 = scmp.lt.s32.totalorder %s17_s13, %s17_s13 }
   0x9   :  { %p706_p3 = scmp.ne.s32.totalorder %s17_s13, %s705_s21  ;;  %p711_p5 = scmp.lt.s32.totalorder %s705_s21, %s705_s21 }
   0xb   :  { %p712_p6 = por %p711_p5, %p710_p4 }
   0xd   :  { %p713_p7 = pnand %p712_p6, %p706_p3 }
   0xf   :  { %716 = shalt.err (!%p713_p7)
}
  0x10   :  { %19 = dma.hbm_to_vmem [thread:$0]  %s942_s0, 64, %s17_s13, [#allocation8]   ;;  %v31_v0 = vlaneseq }
  0x11   :  { %739 = dma.done.wait [#allocation8], 64  }
  0x12   :  { %740 = vsyncadd [#allocation8], 4294967232  ;;  %v744_v1 = vmov 1.0|1.0   ;;  %v745_v2 = vmov 0.0   ;;  %vm325_vm0 = vcmask 1024  }
  0x13   :  { %412 = vmatprep.subr.bf16.mxu0 %v744_v1  ;;  %323 = vst [vmem:[#allocation3] sm:$0xf] %v745_v2  ;;  %324 = vst [vmem:[#allocation4] sm:$0xf] %v745_v2  ;;  %v785_v3 = vshrl.u32 %v31_v0, 7  ;;  %v787_v4 = vand.u32 127, %v31_v0 }
  0x14   :  { %326 = vst.msk [vmem:[#allocation5] sm:$0x3] %vm325_vm0, %v745_v2  ;;  %327 = vst.msk [vmem:[#allocation6] sm:$0x3] %vm325_vm0, %v745_v2  ;;  %v746_v5 = vmov 0   ;;  %v748_v49 = vmov 0.0|0.0  }
  0x15   :  { %685 = vset.pattern.permute.xlu0 %v746_v5  ;;  %686 = vset.pattern.permute.xlu1 %v746_v5  ;;  %v33_v6 = vadd.s32 8, %v785_v3  ;;  %vm67_vm1 = vcmp.le.s32.totalorder %v785_v3, %v787_v4  ;;  %v34_v7 = vadd.s32 16, %v785_v3  ;;  %v35_v8 = vadd.s32 24, %v785_v3  ;;  %v328_v14 = vld [vmem:[%s944_s2] sm:$0x3]  ;;  %s751_s5 = smov [#allocation10]  }
  0x16   :  { %v36_v9 = vadd.s32 32, %v785_v3  ;;  %v37_v10 = vadd.s32 40, %v785_v3  ;;  %v38_v12 = vadd.s32 48, %v785_v3  ;;  %v39_v13 = vadd.s32 56, %v785_v3  ;;  %v822_v21 = vld [vmem:[#allocation7] sm:$0xf] }
  0x17   :  { %vm69_vm2 = vcmp.le.s32.totalorder %v33_v6, %v787_v4  ;;  %vm71_vm3 = vcmp.le.s32.totalorder %v34_v7, %v787_v4  ;;  %vm73_vm4 = vcmp.le.s32.totalorder %v35_v8, %v787_v4  ;;  %v40_v15 = vadd.s32 64, %v785_v3  ;;  %v827_v22 = vld [vmem:[%s943_s1] sm:$0x3]  ;;  %s749_s1 = smov 1   ;;  %s596_s6 = sshll.u32 %s751_s5, 4  ;;  %s597_s6 = int_to_ptr.vmem [resolvable:$true] %s596_s6 }
  0x18   :  { %vm640_vm5 = vmpackc.low %vm69_vm2, %vm67_vm1  ;;  %vm75_vm7 = vcmp.le.s32.totalorder %v36_v9, %v787_v4  ;;  %vm77_vm8 = vcmp.le.s32.totalorder %v37_v10, %v787_v4  ;;  %vm79_vm10 = vcmp.le.s32.totalorder %v38_v12, %v787_v4  ;;  %vm81_vm11 = vcmp.le.s32.totalorder %v39_v13, %v787_v4  ;;  %s717_s8 = scalar_lea.vmem %s597_s6, 16  ;;  %s721_s9 = scalar_lea.vmem %s597_s6, 32 }
  0x19   :  { %641 = vmatpush1.bf16.msk.msra.mxu0 %vm640_vm5, %v744_v1  ;;  %vm642_vm6 = vmpackc.low %vm73_vm4, %vm71_vm3  ;;  %v41_v16 = vadd.s32 72, %v785_v3  ;;  %v747_v17 = vmov 1966171168   ;;  %v42_v19 = vadd.s32 80, %v785_v3  ;;  %vm83_vm13 = vcmp.le.s32.totalorder %v40_v15, %v787_v4  ;;  %p718_p8 = scmp.ne.s32.totalorder %s597_s6, %s717_s8  ;;  %p722_p9 = scmp.lt.s32.totalorder %s597_s6, %s597_s6 }
  0x1a   :  { %414 = vmatprep.subr.bf16.mxu0 %v744_v1  ;;  %vm644_vm9 = vmpackc.low %vm77_vm8, %vm75_vm7  ;;  %v389_v18 = vunpack.c.l.s4 %v747_v17  ;;  %v43_v20 = vadd.s32 88, %v785_v3  ;;  %v338_v23 = vunpack.c.l.bf16 %v827_v22  ;;  %v44_v25 = vadd.s32 96, %v785_v3  ;;  %v524_v2 = vld [vmem:[#allocation3] sm:$0xf]  ;;  %p723_p10 = scmp.lt.s32.totalorder %s721_s9, %s717_s8 }
  0x1b   :  { %v354_v11 = vld [vmem:[#allocation5] sm:$0x3]  ;;  %vm646_vm12 = vmpackc.low %vm81_vm11, %vm79_vm10  ;;  %vm85_vm14 = vcmp.le.s32.totalorder %v41_v16, %v787_v4  ;;  %vm87_vm1 = vcmp.le.s32.totalorder %v42_v19, %v787_v4  ;;  %v45_v26 = vadd.s32 104, %v785_v3  ;;  %v341_v28 = vsub.f32 1.0, %v822_v21  ;;  %v496_v8 = vld [vmem:[#allocation6] sm:$0x3] }
  0x1c   :  { %455 = vperm.xlu0 %685, %v354_v11   ;;  %v390_v24 = vunpack.c.0.s8 %v389_v18  ;;  %vm648_vm15 = vmpackc.low %vm85_vm14, %vm83_vm13  ;;  %vm89_vm2 = vcmp.le.s32.totalorder %v43_v20, %v787_v4  ;;  %v339_v27 = vmul.f32 2.0, %v338_v23  ;;  %v46_v32 = vadd.s32 112, %v785_v3  ;;  %499 = vperm.xlu1 %686, %v496_v8   ;;  %p724_p11 = por %p723_p10, %p722_p9 }
  0x1d   :  { %643 = vmatpush1.bf16.msk.msra.mxu0 %vm642_vm6, %v744_v1  ;;  %vm650_vm3 = vmpackc.low %vm89_vm2, %vm87_vm1  ;;  %v47_v33 = vadd.s32 120, %v785_v3  ;;  %vm91_vm4 = vcmp.le.s32.totalorder %v44_v25, %v787_v4  ;;  %vm93_vm5 = vcmp.le.s32.totalorder %v45_v26, %v787_v4  ;;  %v48_v36 = vadd.s32 128, %v785_v3 }
  0x1e   :  { %416 = vmatprep.subr.bf16.mxu0 %v744_v1  ;;  %v840_v29 = vsub.s32 %v390_v24, %v785_v3  ;;  %v637_v30 = vadd.f32 -1.0, %v339_v27  ;;  %v49_v37 = vadd.s32 136, %v785_v3  ;;  %v859_v38 = vadd.s32 128, %v787_v4  ;;  %vm652_vm6 = vmpackc.low %vm93_vm5, %vm91_vm4  ;;  %p725_p12 = pnand %p724_p11, %p718_p8 }
  0x1f   :  { %vm95_vm7 = vcmp.le.s32.totalorder %v46_v32, %v787_v4  ;;  %vm97_vm8 = vcmp.le.s32.totalorder %v47_v33, %v787_v4  ;;  %v50_v42 = vadd.s32 144, %v785_v3  ;;  %v51_v43 = vadd.s32 152, %v785_v3 }
  0x20   :  { %468 = vperm.xlu0 %685, %v328_v14   ;;  %v845_v31 = vrot.slane %v827_v22, %v840_v29  ;;  %v852_v34 = vmul.f32 %v637_v30, %v341_v28  ;;  %vm102_vm10 = vcmp.le.s32.totalorder %v49_v37, %v859_v38  ;;  %vm654_vm11 = vmpackc.low %vm97_vm8, %vm95_vm7  ;;  %v52_v45 = vadd.s32 160, %v785_v3 }
  0x21   :  { %645 = vmatpush1.bf16.msk.msra.mxu0 %vm644_vm9, %v744_v1  ;;  %vm100_vm9 = vcmp.le.s32.totalorder %v48_v36, %v859_v38  ;;  %vm104_vm13 = vcmp.le.s32.totalorder %v50_v42, %v859_v38  ;;  %vm106_vm14 = vcmp.le.s32.totalorder %v51_v43, %v859_v38  ;;  %v53_v46 = vadd.s32 168, %v785_v3 }
  0x22   :  { %418 = vmatprep.subr.bf16.mxu0 %v744_v1  ;;  %v395_v35 = vcombine.high %v845_v31, %v845_v31  ;;  %v346_v39 = vand.u32 2147483647, %v852_v34  ;;  %vm108_vm1 = vcmp.le.s32.totalorder %v52_v45, %v859_v38  ;;  %v54_v47 = vadd.s32 176, %v785_v3 }
  0x23   :  { %vm110_vm2 = vcmp.le.s32.totalorder %v53_v46, %v859_v38  ;;  %v55_v48 = vadd.s32 184, %v785_v3  ;;  %v56_v50 = vadd.s32 192, %v785_v3  ;;  %v57_v51 = vadd.s32 200, %v785_v3 }
  0x24   :  { %v409_v40 = vrot.slane %v395_v35, %v840_v29  ;;  %v347_v41 = vsub.f32 0.0, %v346_v39  ;;  %vm112_vm4 = vcmp.le.s32.totalorder %v54_v47, %v859_v38  ;;  %v58_v54 = vadd.s32 208, %v785_v3 }
  0x25   :  { %647 = vmatpush1.bf16.msk.msra.mxu0 %vm646_vm12, %v744_v1  ;;  %vm656_vm12 = vmpackc.low %vm102_vm10, %vm100_vm9  ;;  %vm114_vm5 = vcmp.le.s32.totalorder %v55_v48, %v859_v38  ;;  %vm116_vm7 = vcmp.le.s32.totalorder %v56_v50, %v859_v38  ;;  %vm118_vm8 = vcmp.le.s32.totalorder %v57_v51, %v859_v38  ;;  %v59_v55 = vadd.s32 216, %v785_v3 }
  0x26   :  { %420 = vmatprep.subr.bf16.mxu0 %v744_v1  ;;  %444 = vmatprep.mubr.bf16.mxu0 %v409_v40  ;;  %v348_v44 = vmul.f32 1.442695, %v347_v41  ;;  %vm664_vm9 = vmpackc.low %vm118_vm8, %vm116_vm7  ;;  %vm120_vm10 = vcmp.le.s32.totalorder %v58_v54, %v859_v38  ;;  %v60_v56 = vadd.s32 224, %v785_v3  ;;  %v61_v57 = vadd.s32 232, %v785_v3 }
  0x27   :  { %v343_v58 = vmax.f32 %v852_v34, 0.0  ;;  %v344_v59 = vmul.f32 %v852_v34, %v338_v23  ;;  %v62_v60 = vadd.s32 240, %v785_v3  ;;  %v63_v61 = vadd.s32 248, %v785_v3 }
  0x28   :  { %687 = vpow2.f32 %v348_v44  ;;  %v402_v7 = vrot.slane %v845_v31, %v840_v29  ;;  %v473_v10 = vadd.s32 1, %v787_v4  ;;  %v474_v11 = vadd.s32 1, %v859_v38 }
  0x29   :  { %649 = vmatpush1.bf16.msk.msra.mxu0 %vm648_vm15, %v744_v1  ;;  %vm658_vm15 = vmpackc.low %vm106_vm14, %vm104_vm13  ;;  %vm124_vm13 = vcmp.le.s32.totalorder %v60_v56, %v859_v38  ;;  %vm126_vm14 = vcmp.le.s32.totalorder %v61_v57, %v859_v38  ;;  %v345_v62 = vsub.f32 %v343_v58, %v344_v59  ;;  %v750_v39 = vmov 1983009808  }
  0x2a   :  { %422 = vmatprep.subr.bf16.mxu0 %v744_v1  ;;  %v475_v12 = vcvt.s32.f32 %v473_v10  ;;  %v476_v13 = vcvt.s32.f32 %v474_v11  ;;  %v516_v40 = vunpack.c.l.s4 %v750_v39  ;;  %v511_v50 = vmax.f32 %v822_v21, 0.0 }
  0x2b   :  { %vm588_vm7 = vcmask 0  }
  0x2c   :  { %v517_v42 = vunpack.c.0.s8 %v516_v40 }
  0x2d   :  { %651 = vmatpush1.bf16.msk.msra.mxu0 %vm650_vm3, %v744_v1  ;;  %vm660_vm3 = vmpackc.low %vm110_vm2, %vm108_vm1  ;;  %vm128_vm1 = vcmp.le.s32.totalorder %v62_v60, %v859_v38  ;;  %vm130_vm2 = vcmp.le.s32.totalorder %v63_v61, %v859_v38 }
  0x2e   :  { %424 = vmatprep.subr.bf16.mxu0 %v744_v1  ;;  %v520_v48 = vsub.s32 %v517_v42, %v785_v3 }
  0x31   :  { %653 = vmatpush1.bf16.msk.msra.mxu0 %vm652_vm6, %v744_v1  ;;  %vm662_vm6 = vmpackc.low %vm114_vm5, %vm112_vm4  ;;  %vm545_vm4 = vcmask 1041408   ;;  %vm491_vm5 = vcmp.lt.s32.totalorder %v787_v4, 1 }
  0x32   :  { %426 = vmatprep.subr.bf16.mxu0 %v744_v1  ;;  %v688_v52 = vpop.eup %687 }
  0x33   :  { %v350_v53 = vadd.f32 1.0, %v688_v52 }
  0x35   :  { %655 = vmatpush1.bf16.msk.msra.mxu0 %vm654_vm11, %v744_v1  ;;  %689 = vlog2.f32 %v350_v53  ;;  %vm122_vm11 = vcmp.le.s32.totalorder %v59_v55, %v859_v38  ;;  %v527_v53 = vld [vmem:[#allocation4] sm:$0xf] }
  0x36   :  { %657 = vmatprep.subr.msk.bf16.mxu0 %vm656_vm12, %v744_v1  ;;  %vm666_vm12 = vmpackc.low %vm122_vm11, %vm120_vm10 }
  0x39   :  { %429 = vmatpush1.bf16.msra.mxu0 %v748_v49 }
  0x3a   :  { %659 = vmatprep.subr.msk.bf16.mxu0 %vm658_vm15, %v744_v1  ;;  %vm668_vm15 = vmpackc.low %vm126_vm14, %vm124_vm13 }
  0x3d   :  { %431 = vmatpush1.bf16.msra.mxu0 %v748_v49 }
  0x3e   :  { %661 = vmatprep.subr.msk.bf16.mxu0 %vm660_vm3, %v744_v1  ;;  %vm670_vm3 = vmpackc.low %vm130_vm2, %vm128_vm1 }
  0x3f   :  { %v690_v63 = vpop.eup %689 }
  0x40   :  { %v352_v0 = vmul.f32 0.6931472, %v690_v63 }
  0x41   :  { %433 = vmatpush1.bf16.msra.mxu0 %v748_v49 }
  0x42   :  { %663 = vmatprep.subr.msk.bf16.mxu0 %vm662_vm6, %v744_v1  ;;  %v353_v5 = vadd.f32 %v352_v0, %v345_v62  ;;  %vm494_vm6 = vcmp.eq.s32.totalorder %v787_v4, 0 }
  0x44   :  { %v525_v6 = vadd.f32 %v524_v2, %v353_v5 }
  0x45   :  { %435 = vmatpush1.bf16.msra.mxu0 %v748_v49 }
  0x46   :  { %665 = vmatprep.subr.msk.bf16.mxu0 %vm664_vm9, %v744_v1  ;;  %526 = vst [vmem:[#allocation3] sm:$0xf] %v525_v6 }
  0x49   :  { %437 = vmatpush1.bf16.msra.mxu0 %v748_v49 }
  0x4a   :  { %667 = vmatprep.subr.msk.bf16.mxu0 %vm666_vm12, %v744_v1 }
  0x4d   :  { %439 = vmatpush1.bf16.msra.mxu0 %v748_v49  ;;  %v638_v33 = vld.sshfl [vmem:[#allocation3] sm:$0x33 pattern:$0x76325410] }
  0x4e   :  { %669 = vmatprep.subr.msk.bf16.mxu0 %vm668_vm15, %v744_v1  ;;  %v542_v34 = vcombine.high %v638_v33, %v638_v33  ;;  %v546_v35 = vsel %vm545_vm4, %v638_v33, 0.0 }
  0x50   :  { %v547_v36 = vsel %vm545_vm4, %v542_v34, 0.0 }
  0x51   :  { %441 = vmatpush1.bf16.msra.mxu0 %v748_v49  ;;  %v548_v37 = vadd.f32 %v547_v36, %v546_v35 }
  0x52   :  { %671 = vmatprep.subr.msk.bf16.mxu0 %vm670_vm3, %v744_v1 }
  0x55   :  { %443 = vmatpush1.bf16.msra.mxu0 %v748_v49 }
  0x58   :  { %445 = vmatmul.mubr.bf16.vlgmr.msra.gmra.mrb[0].mxu0 %v402_v7 }
  0x9b   :  { %v456_v9 = vpop.permute.xlu0 %455  ;;  %v500_v38 = vpop.permute.xlu1 %499 }
  0x9f   :  { %v469_v14 = vpop.permute.xlu0 %468 }
  0xa0   :  { %v477_v17 = vadd.f32 %v475_v12, %v469_v14  ;;  %v478_v1 = vadd.f32 %v476_v13, %v469_v14 }
 0x12b   :  { %v446_v15 = vpop.f32.mrb[0].mxu0 }
 0x12c   :  { %v458_v16 = vadd.f32 %v456_v9, %v446_v15  ;;  %v448_v18 = vpop.f32.mrb[1].mxu0 }
 0x12d   :  { %v459_v19 = vadd.f32 %v456_v9, %v448_v18  ;;  %v450_v20 = vpop.f32.mrb[2].mxu0 }
 0x12e   :  { %v479_v22 = vsub.f32 %v477_v17, %v458_v16  ;;  %v451_v23 = vpop.f32.mrb[3].mxu0  ;;  %v471_v25 = vsub.f32 %v469_v14, %v458_v16 }
 0x12f   :  { %v480_v24 = vsub.f32 %v478_v1, %v459_v19  ;;  %v472_v27 = vsub.f32 %v469_v14, %v459_v19 }
 0x130   :  { %691 = vrcp.f32 %v479_v22 }
 0x131   :  { %693 = vrcp.f32 %v480_v24 }
 0x13a   :  { %v692_v26 = vpop.eup %691 }
 0x13b   :  { %v694_v28 = vpop.eup %693  ;;  %v482_v29 = vmul.f32 %v692_v26, %v471_v25 }
 0x13c   :  { %v484_v30 = vmul.f32 %v694_v28, %v472_v27 }
 0x13d   :  { %v485_v31 = vsub.f32 1.0, %v482_v29 }
 0x13e   :  { %v486_v32 = vsub.f32 1.0, %v484_v30 }
 0x13f   :  { %487 = vrot.lane.b32.xlu1 %v485_v31, %s749_s1 }
 0x140   :  { %489 = vrot.lane.b32.xlu0 %v486_v32, %s749_s1 }
 0x163   :  { %549 = vadd.xlane.f32.xlu1 %v548_v37 }
 0x174   :  { %507 = vrot.lane.b32.xlu1 %v486_v32, %s749_s1 }
 0x1b1   :  { %v488_v41 = vpop.permute.xlu1 %487 }
 0x1b2   :  { %v490_v43 = vpop.permute.xlu0 %489 }
 0x1b3   :  { %v492_v44 = vsel %vm491_vm5, %v488_v41, %v490_v43  ;;  %v493_v45 = vsel %vm491_vm5, %v490_v43, %v488_v41 }
 0x1b4   :  { %v502_v46 = vsel %vm494_vm6, %v500_v38, %v493_v45  ;;  %v505_v47 = vsub.f32 %v486_v32, %v492_v44 }
 0x1b5   :  { %v504_v49 = vsub.f32 %v485_v31, %v502_v46 }
 0x1b7   :  { %v514_v51 = vcombine.low %v504_v49, %v505_v47 }
 0x1b9   :  { %v521_v52 = vrot.slane %v514_v51, %v520_v48 }
 0x1bb   :  { %v523_v54 = vmul.f32 %v521_v52, %v511_v50 }
 0x1bd   :  { %v528_v55 = vadd.f32 %v527_v53, %v523_v54 }
 0x1bf   :  { %529 = vst [vmem:[#allocation4] sm:$0xf] %v528_v55 }
 0x1c6   :  { %v639_v56 = vld.sshfl [vmem:[#allocation4] sm:$0x33 pattern:$0x76325410] }
 0x1c7   :  { %v568_v57 = vcombine.high %v639_v56, %v639_v56  ;;  %v571_v4 = vsel %vm545_vm4, %v639_v56, 0.0 }
 0x1c9   :  { %v572_v58 = vsel %vm545_vm4, %v568_v57, 0.0 }
 0x1ca   :  { %v573_v59 = vadd.f32 %v572_v58, %v571_v4 }
 0x1cc   :  { %574 = vadd.xlane.f32.xlu0 %v573_v59 }
 0x1e2   :  { %461 = vrot.lane.b32.xlu0 %v459_v19, %s749_s1 }
 0x1f0   :  { %v550_v3 = vpop.xlane.xlu1 %549 }
 0x1f1   :  { %v551_v60 = vrot.slane %v550_v3, 4 }
 0x1f3   :  { %v552_v61 = vadd.f32 %v551_v60, %v550_v3 }
 0x1f4   :  { %v508_v21 = vpop.permute.xlu1 %507 }
 0x1f5   :  { %v553_v62 = vrot.slane %v552_v61, 2  ;;  %510 = vst.msk [vmem:[#allocation6] sm:$0x3] %vm325_vm0, %v508_v21 }
 0x1f7   :  { %v554_v63 = vadd.f32 %v553_v62, %v552_v61 }
 0x1f9   :  { %v555_v0 = vrot.slane %v554_v63, 1 }
 0x1fb   :  { %v556_v2 = vadd.f32 %v555_v0, %v554_v63 }
 0x1fd   :  { %672 = vpush %v556_v2 }
 0x22e   :  { %s673_s26 = spop %672 }
 0x22f   :  { %s558_s27 = smul.f32 0.001953125, %s673_s26 }
 0x231   :  { %s584_s30 = smul.f32 0.8, %s558_s27 }
 0x259   :  { %v575_v5 = vpop.xlane.xlu0 %574 }
 0x25a   :  { %v576_v6 = vrot.slane %v575_v5, 4 }
 0x25c   :  { %v577_v7 = vadd.f32 %v576_v6, %v575_v5 }
 0x25d   :  { %v462_v8 = vpop.permute.xlu0 %461 }
 0x25e   :  { %v578_v9 = vrot.slane %v577_v7, 2  ;;  %465 = vst.msk [vmem:[#allocation5] sm:$0x3] %vm325_vm0, %v462_v8 }
 0x260   :  { %v579_v10 = vadd.f32 %v578_v9, %v577_v7 }
 0x262   :  { %v580_v11 = vrot.slane %v579_v10, 1 }
 0x264   :  { %v581_v12 = vadd.f32 %v580_v11, %v579_v10 }
 0x266   :  { %674 = vpush %v581_v12 }
 0x297   :  { %s675_s28 = spop %674 }
 0x298   :  { %s583_s29 = smul.f32 0.5, %s675_s28 }
 0x29a   :  { %s585_s4 = smul.f32 0.2, %s583_s29 }
 0x29c   :  { %s586_s7 = sadd.f32 %s585_s4, %s584_s30 }
 0x29e   :  { %v587_v13 = vstv %s586_s7 }
 0x29f   :  { %589 = vst.msk [vmem:[#allocation10] sm:$0x1] %vm588_vm7, %v587_v13 }
 0x2a0   :  { %728 = shalt.err (!%p725_p12)
}
 0x2a1   :  { %s729_s12 = scalar_lea.hbm %s945_s3, 16 }
 0x2a2   :  { %p730_p13 = scmp.ne.s32.totalorder %s945_s3, %s729_s12  ;;  %p733_p0 = scmp.lt.u32.totalorder %s729_s12, %s945_s3 }
 0x2a4   :  { %p735_p1 = pnand %p733_p0, %p730_p13 }
 0x2a6   :  { %738 = shalt.err (!%p735_p1)
}
 0x2a7   :  { %599 = dma.vmem_to_hbm [thread:$0]  %s597_s6, 16, %s945_s3, [#allocation9]  }
 0x2a8   :  { %741 = dma.done.wait [#allocation9], 16  }
 0x2a9   :  { %742 = vsyncadd [#allocation9], 4294967280 }
 0x2aa   :  { %603 = vsyncpa [#allocation8], 1 }
 0x2ab   :  { %604 = vsyncpa [#allocation9], 1 }

</bundles_post_ra>
